<compile_context>
chip_gen: v5e
topology: v5e:2x2
jax: 0.10.0
libtpu: 0.0.40
codegen_flags: <defaults>
</compile_context>

<pallas_src>
import functools
import math

import jax
import jax.numpy as jnp
from jax import lax
from jax.experimental import pallas as pl
from jax.experimental.pallas import tpu as pltpu


def _round_up(x, m):
    return (x + m - 1) // m * m


def _vmem_budget_bytes():
    """Generation-aware VMEM budget (~60% of physical, v7x-safe fallback)."""
    cap = 64 << 20  # assume v7x (smallest VMEM) if the query fails
    try:
        info = pltpu.get_tpu_info()
        cap = int(getattr(info, "vmem_capacity_bytes", cap))
    except Exception:
        pass
    return max((cap * 5) // 8, 16 << 20)


def _choose_token_tile(T, token_tile, row_bytes, vmem_budget):
    """Pick the per-step token tile (multiple of 8).

    Preferences: (a) double/triple-buffered output tile fits the VMEM budget,
    (b) >= 2 grid tiles when T allows it (v7x has 2 TensorCores),
    (c) tile divides the 8-aligned token count so there are no padded rows and
        no out[:T] slice copy on the way out.
    """
    T8 = _round_up(T, 8)
    tt_vmem_max = max(8, (vmem_budget // (3 * row_bytes)) // 8 * 8)
    cap = min(token_tile, tt_vmem_max, T8)
    cap = max(8, (cap // 8) * 8)
    if T8 >= 16:  # leave work for a second TensorCore (v7x); harmless elsewhere
        cap = min(cap, max(8, ((T8 // 2) // 8) * 8))
    best = None
    for tt in range(cap, 7, -8):
        if T8 % tt == 0:
            best = tt
            break
    if best is not None and best * 4 >= cap:
        return best, T8            # exact tiling: T_pad == T8 (== T when T%8==0)
    return cap, _round_up(T8, cap)  # awkward T: pad and slice


def _gather_kernel(ids_ref, w_hbm, out_ref, sem, *, tt, num_tokens, vocab_size):
    """One grid step: gather `tt` embedding rows from HBM into the output tile.

    ids_ref : SMEM (T_pad,) int32  -- scalar-prefetched raw global token ids
    w_hbm   : HBM  (V, D)          -- full (concatenated) embedding table
    out_ref : VMEM (tt, D)         -- output tile for this token block
    sem     : DMA semaphore (1,)   -- shared by all in-flight row copies
    """
    D = out_ref.shape[1]
    base = pl.program_id(0) * tt

    def issue(i, n_started):
        tok = base + i
        row = ids_ref[tok]
        in_range = jnp.logical_and(row >= 0, row < vocab_size)
        is_real = tok < num_tokens          # guard padded rows of the last tile
        do_copy = jnp.logical_and(in_range, is_real)

        @pl.when(do_copy)
        def _():
            pltpu.make_async_copy(
                w_hbm.at[pl.ds(row, 1), :],
                out_ref.at[pl.ds(i, 1), :],
                sem.at[0],
            ).start()

        # Out-of-range id: every TP rank masks it, so the all-reduced row is 0.
        @pl.when(jnp.logical_and(jnp.logical_not(in_range), is_real))
        def _():
            out_ref[pl.ds(i, 1), :] = jnp.zeros((1, D), out_ref.dtype)

        return n_started + do_copy.astype(jnp.int32)

    n_started = lax.fori_loop(0, tt, issue, jnp.int32(0), unroll=8)

    # Drain: wait once per started copy on the shared semaphore.  No ids_ref
    # (SMEM) reads here; the descriptor only provides the per-copy size.
    def drain(_, carry):
        pltpu.make_async_copy(
            w_hbm.at[pl.ds(0, 1), :],
            out_ref.at[pl.ds(0, 1), :],
            sem.at[0],
        ).wait()
        return carry

    lax.fori_loop(jnp.int32(0), n_started, drain, jnp.int32(0))


@functools.partial(jax.jit, static_argnames=("token_tile",))
def _embedding_gather(flat_ids, weight, *, token_tile):
    """Gather weight[flat_ids] (zero row for invalid ids) with one Pallas kernel."""
    T = flat_ids.shape[0]
    V, D = weight.shape
    itemsize = jnp.dtype(weight.dtype).itemsize

    vmem_budget = _vmem_budget_bytes()
    tt, T_pad = _choose_token_tile(T, token_tile, D * itemsize, vmem_budget)

    ids = flat_ids.astype(jnp.int32)
    if T_pad != T:
        ids = jnp.pad(ids, (0, T_pad - T))

    tile_bytes = tt * D * itemsize
    vmem_limit = min(max(3 * tile_bytes + (2 << 20), 8 << 20), vmem_budget)

    kernel = functools.partial(_gather_kernel, tt=tt, num_tokens=T, vocab_size=V)

    out = pl.pallas_call(
        kernel,
        out_shape=jax.ShapeDtypeStruct((T_pad, D), weight.dtype),
        grid_spec=pltpu.PrefetchScalarGridSpec(
            num_scalar_prefetch=1,                         # ids -> SMEM
            grid=(T_pad // tt,),
            in_specs=[pl.BlockSpec(memory_space=pl.ANY)],  # weight stays in HBM
            out_specs=pl.BlockSpec((tt, D), lambda t, ids_ref: (t, 0)),
            scratch_shapes=[pltpu.SemaphoreType.DMA((1,))],
        ),
        compiler_params=pltpu.CompilerParams(
            dimension_semantics=("parallel",),
            vmem_limit_bytes=vmem_limit,
        ),
    )(ids, weight)
    return out if T_pad == T else out[:T]


def make_vocab_parallel_embedding(weight_shards, num_embeddings=None, *,
                                  token_tile=256):
    """Build a forward() closure equivalent to MyVocabParallelEmbedding.forward
    across all (simulated) TP ranks.

    Per-rank masking + local shard lookup + zeroing of masked rows +
    all-reduce(sum) equals a single gather into the concatenated vocab table,
    so the shards are concatenated ONCE here (module-construction time, not per
    call) and forward() runs one fused gather kernel.  In a real TP deployment
    each device runs the same gather on its own shard (out-of-range rows are
    already zeroed in-kernel) followed by a psum; results are identical.
    """
    shards = [jnp.asarray(w) for w in weight_shards]
    full_weight = shards[0] if len(shards) == 1 else jnp.concatenate(shards, axis=0)
    full_weight = jax.device_put(full_weight)
    if num_embeddings is None:
        num_embeddings = full_weight.shape[0]
    assert full_weight.shape[0] == num_embeddings
    embed_dim = full_weight.shape[1]

    def forward(input_ids):
        B, S = input_ids.shape
        flat = input_ids.reshape(B * S)
        out = _embedding_gather(flat, full_weight, token_tile=token_tile)
        return out.reshape(B, S, embed_dim)

    return forward


def validate_input_ids(input_ids, num_embeddings):
    """Host-side equivalent of the module's ValueError check (kept out of jit)."""
    if bool(jax.device_get(jnp.any(input_ids >= num_embeddings))):
        raise ValueError(
            "There is an input id in the input that is greater than the "
            "highest possible input id."
        )


if __name__ == "__main__":
    # Small, deterministic setup.
    num_embeddings = 256      # global vocab
    embedding_dim = 128
    tp_size = 2
    batch, seq = 2, 8         # T = 16 tokens

    key = jax.random.PRNGKey(0)
    k_w, k_ids = jax.random.split(key)

    # Deterministic "xavier_normal_"-style master weight, split over vocab dim
    # (partition_dim=0), mirroring _initialize_affine_weight_cpu.
    std = math.sqrt(2.0 / float(num_embeddings + embedding_dim))
    master_weight = std * jax.random.normal(
        k_w, (num_embeddings, embedding_dim), dtype=jnp.float32
    )
    per_part = num_embeddings // tp_size
    weight_shards = [
        master_weight[r * per_part:(r + 1) * per_part] for r in range(tp_size)
    ]

    input_ids = jax.random.randint(
        k_ids, (batch, seq), 0, num_embeddings, dtype=jnp.int32
    )

    # Module's ValueError check, done host-side outside the hot path.
    validate_input_ids(input_ids, num_embeddings)

    embed_forward = make_vocab_parallel_embedding(weight_shards, num_embeddings)
    out = jax.block_until_ready(embed_forward(input_ids))

    # Reference: plain embedding lookup into the full (non-parallel) table.
    ref = jnp.take(master_weight, input_ids.reshape(-1), axis=0).reshape(
        batch, seq, embedding_dim
    )
    assert out.shape == (batch, seq, embedding_dim)
    assert bool(jnp.array_equal(out, ref)), "mismatch vs reference"

    # Out-of-range / negative ids: with tp>1 every rank masks them, so the
    # all-reduced output row is exactly zero (no clamping).
    bad_ids = input_ids.at[0, 0].set(num_embeddings + 5).at[1, 3].set(-7)
    out_bad = jax.block_until_ready(embed_forward(bad_ids))
    ref_bad = jnp.take(
        master_weight, jnp.clip(bad_ids, 0, num_embeddings - 1).reshape(-1), axis=0
    ).reshape(batch, seq, embedding_dim)
    ref_bad = ref_bad.at[0, 0].set(0.0).at[1, 3].set(0.0)
    assert bool(jnp.array_equal(out_bad, ref_bad)), "mismatch on masked rows"

    print("KERNEL_OK")
</pallas_src>

<mosaic_0001>
module attributes {stable_mosaic.version = 11 : i64} {
  func.func @_gather_kernel(%arg0: i32, %arg1: memref<16xi32, #tpu.memory_space<smem>>, %arg2: memref<256x128xf32, #tpu.memory_space<any>>, %arg3: memref<8x128xf32, #tpu.memory_space<vmem>>, %arg4: memref<1x!tpu.dma_semaphore, #tpu.memory_space<semaphore_mem>>) attributes {dimension_semantics = [#tpu.dimension_semantics<parallel>], iteration_bounds = array<i64: 2>, scalar_prefetch = 1 : i64, scratch_operands = 1 : i64, tpu.core_type = #tpu.core_type<tc>, window_params = [{}, {transform_indices = @transform_1, window_bounds = array<i64: 8, 128>}]} {
    %c8_i32 = arith.constant 8 : i32
    %0 = arith.muli %arg0, %c8_i32 : i32
    %c0_i32 = arith.constant 0 : i32
    %c0_i32_0 = arith.constant 0 : i32
    %1 = arith.addi %0, %c0_i32_0 : i32
    %2 = arith.index_cast %1 : i32 to index
    %3 = memref.load %arg1[%2] : memref<16xi32, #tpu.memory_space<smem>>
    %c0_i32_1 = arith.constant 0 : i32
    %4 = arith.cmpi sge, %3, %c0_i32_1 : i32
    %c256_i32 = arith.constant 256 : i32
    %5 = arith.cmpi slt, %3, %c256_i32 : i32
    %6 = arith.andi %4, %5 : i1
    %c16_i32 = arith.constant 16 : i32
    %7 = arith.cmpi slt, %1, %c16_i32 : i32
    %8 = arith.andi %6, %7 : i1
    %9 = arith.extui %8 : i1 to i32
    %c0_i32_2 = arith.constant 0 : i32
    %10 = arith.cmpi ne, %9, %c0_i32_2 : i32
    scf.if %10 {
      %c0_i32_50 = arith.constant 0 : i32
      %c0_i32_51 = arith.constant 0 : i32
      %131 = tpu.memref_slice %arg2[%3, %c0_i32_51] : memref<256x128xf32, #tpu.memory_space<any>> -> memref<1x128xf32, #tpu.memory_space<any>>
      %c0_i32_52 = arith.constant 0 : i32
      %132 = tpu.memref_slice %arg3[%c0_i32_0, %c0_i32_52] : memref<8x128xf32, #tpu.memory_space<vmem>> -> memref<1x128xf32, #tpu.memory_space<vmem>>
      %133 = tpu.memref_slice %arg4[%c0_i32_50] : memref<1x!tpu.dma_semaphore, #tpu.memory_space<semaphore_mem>> -> memref<1x!tpu.dma_semaphore, #tpu.memory_space<semaphore_mem>>
      %134 = tpu.memref_squeeze %133 : memref<1x!tpu.dma_semaphore, #tpu.memory_space<semaphore_mem>> -> memref<!tpu.dma_semaphore, #tpu.memory_space<semaphore_mem>>
      tpu.enqueue_dma source(%131 : memref<1x128xf32, #tpu.memory_space<any>>) target(%132 : memref<1x128xf32, #tpu.memory_space<vmem>>) target_semaphore(%134 : memref<!tpu.dma_semaphore, #tpu.memory_space<semaphore_mem>>)
    } else {
    }
    %true = arith.constant true
    %11 = arith.xori %6, %true : i1
    %12 = arith.andi %11, %7 : i1
    %13 = arith.extui %12 : i1 to i32
    %c0_i32_3 = arith.constant 0 : i32
    %14 = arith.cmpi ne, %13, %c0_i32_3 : i32
    scf.if %14 {
      %cst = arith.constant 0.000000e+00 : f32
      %131 = vector.broadcast %cst : f32 to vector<1x128xf32>
      %132 = arith.index_cast %c0_i32_0 : i32 to index
      %c0 = arith.constant 0 : index
      %133 = vector.load %arg3[%132, %c0] : memref<8x128xf32, #tpu.memory_space<vmem>>, vector<1x128xf32>
      tpu.vector_store %arg3[%132, %c0], %131 {strides = array<i32>} : memref<8x128xf32, #tpu.memory_space<vmem>>, vector<1x128xf32>,
    } else {
    }
    %15 = arith.extui %8 : i1 to i32
    %16 = arith.addi %c0_i32, %15 : i32
    %c1_i32 = arith.constant 1 : i32
    %17 = arith.addi %0, %c1_i32 : i32
    %18 = arith.index_cast %17 : i32 to index
    %19 = memref.load %arg1[%18] : memref<16xi32, #tpu.memory_space<smem>>
    %c0_i32_4 = arith.constant 0 : i32
    %20 = arith.cmpi sge, %19, %c0_i32_4 : i32
    %c256_i32_5 = arith.constant 256 : i32
    %21 = arith.cmpi slt, %19, %c256_i32_5 : i32
    %22 = arith.andi %20, %21 : i1
    %c16_i32_6 = arith.constant 16 : i32
    %23 = arith.cmpi slt, %17, %c16_i32_6 : i32
    %24 = arith.andi %22, %23 : i1
    %25 = arith.extui %24 : i1 to i32
    %c0_i32_7 = arith.constant 0 : i32
    %26 = arith.cmpi ne, %25, %c0_i32_7 : i32
    scf.if %26 {
      %c0_i32_50 = arith.constant 0 : i32
      %c0_i32_51 = arith.constant 0 : i32
      %131 = tpu.memref_slice %arg2[%19, %c0_i32_51] : memref<256x128xf32, #tpu.memory_space<any>> -> memref<1x128xf32, #tpu.memory_space<any>>
      %c0_i32_52 = arith.constant 0 : i32
      %132 = tpu.memref_slice %arg3[%c1_i32, %c0_i32_52] : memref<8x128xf32, #tpu.memory_space<vmem>> -> memref<1x128xf32, #tpu.memory_space<vmem>>
      %133 = tpu.memref_slice %arg4[%c0_i32_50] : memref<1x!tpu.dma_semaphore, #tpu.memory_space<semaphore_mem>> -> memref<1x!tpu.dma_semaphore, #tpu.memory_space<semaphore_mem>>
      %134 = tpu.memref_squeeze %133 : memref<1x!tpu.dma_semaphore, #tpu.memory_space<semaphore_mem>> -> memref<!tpu.dma_semaphore, #tpu.memory_space<semaphore_mem>>
      tpu.enqueue_dma source(%131 : memref<1x128xf32, #tpu.memory_space<any>>) target(%132 : memref<1x128xf32, #tpu.memory_space<vmem>>) target_semaphore(%134 : memref<!tpu.dma_semaphore, #tpu.memory_space<semaphore_mem>>)
    } else {
    }
    %true_8 = arith.constant true
    %27 = arith.xori %22, %true_8 : i1
    %28 = arith.andi %27, %23 : i1
    %29 = arith.extui %28 : i1 to i32
    %c0_i32_9 = arith.constant 0 : i32
    %30 = arith.cmpi ne, %29, %c0_i32_9 : i32
    scf.if %30 {
      %cst = arith.constant 0.000000e+00 : f32
      %131 = vector.broadcast %cst : f32 to vector<1x128xf32>
      %132 = arith.index_cast %c1_i32 : i32 to index
      %c0 = arith.constant 0 : index
      %133 = vector.load %arg3[%132, %c0] : memref<8x128xf32, #tpu.memory_space<vmem>>, vector<1x128xf32>
      tpu.vector_store %arg3[%132, %c0], %131 {strides = array<i32>} : memref<8x128xf32, #tpu.memory_space<vmem>>, vector<1x128xf32>,
    } else {
    }
    %31 = arith.extui %24 : i1 to i32
    %32 = arith.addi %16, %31 : i32
    %c2_i32 = arith.constant 2 : i32
    %33 = arith.addi %0, %c2_i32 : i32
    %34 = arith.index_cast %33 : i32 to index
    %35 = memref.load %arg1[%34] : memref<16xi32, #tpu.memory_space<smem>>
    %c0_i32_10 = arith.constant 0 : i32
    %36 = arith.cmpi sge, %35, %c0_i32_10 : i32
    %c256_i32_11 = arith.constant 256 : i32
    %37 = arith.cmpi slt, %35, %c256_i32_11 : i32
    %38 = arith.andi %36, %37 : i1
    %c16_i32_12 = arith.constant 16 : i32
    %39 = arith.cmpi slt, %33, %c16_i32_12 : i32
    %40 = arith.andi %38, %39 : i1
    %41 = arith.extui %40 : i1 to i32
    %c0_i32_13 = arith.constant 0 : i32
    %42 = arith.cmpi ne, %41, %c0_i32_13 : i32
    scf.if %42 {
      %c0_i32_50 = arith.constant 0 : i32
      %c0_i32_51 = arith.constant 0 : i32
      %131 = tpu.memref_slice %arg2[%35, %c0_i32_51] : memref<256x128xf32, #tpu.memory_space<any>> -> memref<1x128xf32, #tpu.memory_space<any>>
      %c0_i32_52 = arith.constant 0 : i32
      %132 = tpu.memref_slice %arg3[%c2_i32, %c0_i32_52] : memref<8x128xf32, #tpu.memory_space<vmem>> -> memref<1x128xf32, #tpu.memory_space<vmem>>
      %133 = tpu.memref_slice %arg4[%c0_i32_50] : memref<1x!tpu.dma_semaphore, #tpu.memory_space<semaphore_mem>> -> memref<1x!tpu.dma_semaphore, #tpu.memory_space<semaphore_mem>>
      %134 = tpu.memref_squeeze %133 : memref<1x!tpu.dma_semaphore, #tpu.memory_space<semaphore_mem>> -> memref<!tpu.dma_semaphore, #tpu.memory_space<semaphore_mem>>
      tpu.enqueue_dma source(%131 : memref<1x128xf32, #tpu.memory_space<any>>) target(%132 : memref<1x128xf32, #tpu.memory_space<vmem>>) target_semaphore(%134 : memref<!tpu.dma_semaphore, #tpu.memory_space<semaphore_mem>>)
    } else {
    }
    %true_14 = arith.constant true
    %43 = arith.xori %38, %true_14 : i1
    %44 = arith.andi %43, %39 : i1
    %45 = arith.extui %44 : i1 to i32
    %c0_i32_15 = arith.constant 0 : i32
    %46 = arith.cmpi ne, %45, %c0_i32_15 : i32
    scf.if %46 {
      %cst = arith.constant 0.000000e+00 : f32
      %131 = vector.broadcast %cst : f32 to vector<1x128xf32>
      %132 = arith.index_cast %c2_i32 : i32 to index
      %c0 = arith.constant 0 : index
      %133 = vector.load %arg3[%132, %c0] : memref<8x128xf32, #tpu.memory_space<vmem>>, vector<1x128xf32>
      tpu.vector_store %arg3[%132, %c0], %131 {strides = array<i32>} : memref<8x128xf32, #tpu.memory_space<vmem>>, vector<1x128xf32>,
    } else {
    }
    %47 = arith.extui %40 : i1 to i32
    %48 = arith.addi %32, %47 : i32
    %c3_i32 = arith.constant 3 : i32
    %49 = arith.addi %0, %c3_i32 : i32
    %50 = arith.index_cast %49 : i32 to index
    %51 = memref.load %arg1[%50] : memref<16xi32, #tpu.memory_space<smem>>
    %c0_i32_16 = arith.constant 0 : i32
    %52 = arith.cmpi sge, %51, %c0_i32_16 : i32
    %c256_i32_17 = arith.constant 256 : i32
    %53 = arith.cmpi slt, %51, %c256_i32_17 : i32
    %54 = arith.andi %52, %53 : i1
    %c16_i32_18 = arith.constant 16 : i32
    %55 = arith.cmpi slt, %49, %c16_i32_18 : i32
    %56 = arith.andi %54, %55 : i1
    %57 = arith.extui %56 : i1 to i32
    %c0_i32_19 = arith.constant 0 : i32
    %58 = arith.cmpi ne, %57, %c0_i32_19 : i32
    scf.if %58 {
      %c0_i32_50 = arith.constant 0 : i32
      %c0_i32_51 = arith.constant 0 : i32
      %131 = tpu.memref_slice %arg2[%51, %c0_i32_51] : memref<256x128xf32, #tpu.memory_space<any>> -> memref<1x128xf32, #tpu.memory_space<any>>
      %c0_i32_52 = arith.constant 0 : i32
      %132 = tpu.memref_slice %arg3[%c3_i32, %c0_i32_52] : memref<8x128xf32, #tpu.memory_space<vmem>> -> memref<1x128xf32, #tpu.memory_space<vmem>>
      %133 = tpu.memref_slice %arg4[%c0_i32_50] : memref<1x!tpu.dma_semaphore, #tpu.memory_space<semaphore_mem>> -> memref<1x!tpu.dma_semaphore, #tpu.memory_space<semaphore_mem>>
      %134 = tpu.memref_squeeze %133 : memref<1x!tpu.dma_semaphore, #tpu.memory_space<semaphore_mem>> -> memref<!tpu.dma_semaphore, #tpu.memory_space<semaphore_mem>>
      tpu.enqueue_dma source(%131 : memref<1x128xf32, #tpu.memory_space<any>>) target(%132 : memref<1x128xf32, #tpu.memory_space<vmem>>) target_semaphore(%134 : memref<!tpu.dma_semaphore, #tpu.memory_space<semaphore_mem>>)
    } else {
    }
    %true_20 = arith.constant true
    %59 = arith.xori %54, %true_20 : i1
    %60 = arith.andi %59, %55 : i1
    %61 = arith.extui %60 : i1 to i32
    %c0_i32_21 = arith.constant 0 : i32
    %62 = arith.cmpi ne, %61, %c0_i32_21 : i32
    scf.if %62 {
      %cst = arith.constant 0.000000e+00 : f32
      %131 = vector.broadcast %cst : f32 to vector<1x128xf32>
      %132 = arith.index_cast %c3_i32 : i32 to index
      %c0 = arith.constant 0 : index
      %133 = vector.load %arg3[%132, %c0] : memref<8x128xf32, #tpu.memory_space<vmem>>, vector<1x128xf32>
      tpu.vector_store %arg3[%132, %c0], %131 {strides = array<i32>} : memref<8x128xf32, #tpu.memory_space<vmem>>, vector<1x128xf32>,
    } else {
    }
    %63 = arith.extui %56 : i1 to i32
    %64 = arith.addi %48, %63 : i32
    %c4_i32 = arith.constant 4 : i32
    %65 = arith.addi %0, %c4_i32 : i32
    %66 = arith.index_cast %65 : i32 to index
    %67 = memref.load %arg1[%66] : memref<16xi32, #tpu.memory_space<smem>>
    %c0_i32_22 = arith.constant 0 : i32
    %68 = arith.cmpi sge, %67, %c0_i32_22 : i32
    %c256_i32_23 = arith.constant 256 : i32
    %69 = arith.cmpi slt, %67, %c256_i32_23 : i32
    %70 = arith.andi %68, %69 : i1
    %c16_i32_24 = arith.constant 16 : i32
    %71 = arith.cmpi slt, %65, %c16_i32_24 : i32
    %72 = arith.andi %70, %71 : i1
    %73 = arith.extui %72 : i1 to i32
    %c0_i32_25 = arith.constant 0 : i32
    %74 = arith.cmpi ne, %73, %c0_i32_25 : i32
    scf.if %74 {
      %c0_i32_50 = arith.constant 0 : i32
      %c0_i32_51 = arith.constant 0 : i32
      %131 = tpu.memref_slice %arg2[%67, %c0_i32_51] : memref<256x128xf32, #tpu.memory_space<any>> -> memref<1x128xf32, #tpu.memory_space<any>>
      %c0_i32_52 = arith.constant 0 : i32
      %132 = tpu.memref_slice %arg3[%c4_i32, %c0_i32_52] : memref<8x128xf32, #tpu.memory_space<vmem>> -> memref<1x128xf32, #tpu.memory_space<vmem>>
      %133 = tpu.memref_slice %arg4[%c0_i32_50] : memref<1x!tpu.dma_semaphore, #tpu.memory_space<semaphore_mem>> -> memref<1x!tpu.dma_semaphore, #tpu.memory_space<semaphore_mem>>
      %134 = tpu.memref_squeeze %133 : memref<1x!tpu.dma_semaphore, #tpu.memory_space<semaphore_mem>> -> memref<!tpu.dma_semaphore, #tpu.memory_space<semaphore_mem>>
      tpu.enqueue_dma source(%131 : memref<1x128xf32, #tpu.memory_space<any>>) target(%132 : memref<1x128xf32, #tpu.memory_space<vmem>>) target_semaphore(%134 : memref<!tpu.dma_semaphore, #tpu.memory_space<semaphore_mem>>)
    } else {
    }
    %true_26 = arith.constant true
    %75 = arith.xori %70, %true_26 : i1
    %76 = arith.andi %75, %71 : i1
    %77 = arith.extui %76 : i1 to i32
    %c0_i32_27 = arith.constant 0 : i32
    %78 = arith.cmpi ne, %77, %c0_i32_27 : i32
    scf.if %78 {
      %cst = arith.constant 0.000000e+00 : f32
      %131 = vector.broadcast %cst : f32 to vector<1x128xf32>
      %132 = arith.index_cast %c4_i32 : i32 to index
      %c0 = arith.constant 0 : index
      %133 = vector.load %arg3[%132, %c0] : memref<8x128xf32, #tpu.memory_space<vmem>>, vector<1x128xf32>
      tpu.vector_store %arg3[%132, %c0], %131 {strides = array<i32>} : memref<8x128xf32, #tpu.memory_space<vmem>>, vector<1x128xf32>,
    } else {
    }
    %79 = arith.extui %72 : i1 to i32
    %80 = arith.addi %64, %79 : i32
    %c5_i32 = arith.constant 5 : i32
    %81 = arith.addi %0, %c5_i32 : i32
    %82 = arith.index_cast %81 : i32 to index
    %83 = memref.load %arg1[%82] : memref<16xi32, #tpu.memory_space<smem>>
    %c0_i32_28 = arith.constant 0 : i32
    %84 = arith.cmpi sge, %83, %c0_i32_28 : i32
    %c256_i32_29 = arith.constant 256 : i32
    %85 = arith.cmpi slt, %83, %c256_i32_29 : i32
    %86 = arith.andi %84, %85 : i1
    %c16_i32_30 = arith.constant 16 : i32
    %87 = arith.cmpi slt, %81, %c16_i32_30 : i32
    %88 = arith.andi %86, %87 : i1
    %89 = arith.extui %88 : i1 to i32
    %c0_i32_31 = arith.constant 0 : i32
    %90 = arith.cmpi ne, %89, %c0_i32_31 : i32
    scf.if %90 {
      %c0_i32_50 = arith.constant 0 : i32
      %c0_i32_51 = arith.constant 0 : i32
      %131 = tpu.memref_slice %arg2[%83, %c0_i32_51] : memref<256x128xf32, #tpu.memory_space<any>> -> memref<1x128xf32, #tpu.memory_space<any>>
      %c0_i32_52 = arith.constant 0 : i32
      %132 = tpu.memref_slice %arg3[%c5_i32, %c0_i32_52] : memref<8x128xf32, #tpu.memory_space<vmem>> -> memref<1x128xf32, #tpu.memory_space<vmem>>
      %133 = tpu.memref_slice %arg4[%c0_i32_50] : memref<1x!tpu.dma_semaphore, #tpu.memory_space<semaphore_mem>> -> memref<1x!tpu.dma_semaphore, #tpu.memory_space<semaphore_mem>>
      %134 = tpu.memref_squeeze %133 : memref<1x!tpu.dma_semaphore, #tpu.memory_space<semaphore_mem>> -> memref<!tpu.dma_semaphore, #tpu.memory_space<semaphore_mem>>
      tpu.enqueue_dma source(%131 : memref<1x128xf32, #tpu.memory_space<any>>) target(%132 : memref<1x128xf32, #tpu.memory_space<vmem>>) target_semaphore(%134 : memref<!tpu.dma_semaphore, #tpu.memory_space<semaphore_mem>>)
    } else {
    }
    %true_32 = arith.constant true
    %91 = arith.xori %86, %true_32 : i1
    %92 = arith.andi %91, %87 : i1
    %93 = arith.extui %92 : i1 to i32
    %c0_i32_33 = arith.constant 0 : i32
    %94 = arith.cmpi ne, %93, %c0_i32_33 : i32
    scf.if %94 {
      %cst = arith.constant 0.000000e+00 : f32
      %131 = vector.broadcast %cst : f32 to vector<1x128xf32>
      %132 = arith.index_cast %c5_i32 : i32 to index
      %c0 = arith.constant 0 : index
      %133 = vector.load %arg3[%132, %c0] : memref<8x128xf32, #tpu.memory_space<vmem>>, vector<1x128xf32>
      tpu.vector_store %arg3[%132, %c0], %131 {strides = array<i32>} : memref<8x128xf32, #tpu.memory_space<vmem>>, vector<1x128xf32>,
    } else {
    }
    %95 = arith.extui %88 : i1 to i32
    %96 = arith.addi %80, %95 : i32
    %c6_i32 = arith.constant 6 : i32
    %97 = arith.addi %0, %c6_i32 : i32
    %98 = arith.index_cast %97 : i32 to index
    %99 = memref.load %arg1[%98] : memref<16xi32, #tpu.memory_space<smem>>
    %c0_i32_34 = arith.constant 0 : i32
    %100 = arith.cmpi sge, %99, %c0_i32_34 : i32
    %c256_i32_35 = arith.constant 256 : i32
    %101 = arith.cmpi slt, %99, %c256_i32_35 : i32
    %102 = arith.andi %100, %101 : i1
    %c16_i32_36 = arith.constant 16 : i32
    %103 = arith.cmpi slt, %97, %c16_i32_36 : i32
    %104 = arith.andi %102, %103 : i1
    %105 = arith.extui %104 : i1 to i32
    %c0_i32_37 = arith.constant 0 : i32
    %106 = arith.cmpi ne, %105, %c0_i32_37 : i32
    scf.if %106 {
      %c0_i32_50 = arith.constant 0 : i32
      %c0_i32_51 = arith.constant 0 : i32
      %131 = tpu.memref_slice %arg2[%99, %c0_i32_51] : memref<256x128xf32, #tpu.memory_space<any>> -> memref<1x128xf32, #tpu.memory_space<any>>
      %c0_i32_52 = arith.constant 0 : i32
      %132 = tpu.memref_slice %arg3[%c6_i32, %c0_i32_52] : memref<8x128xf32, #tpu.memory_space<vmem>> -> memref<1x128xf32, #tpu.memory_space<vmem>>
      %133 = tpu.memref_slice %arg4[%c0_i32_50] : memref<1x!tpu.dma_semaphore, #tpu.memory_space<semaphore_mem>> -> memref<1x!tpu.dma_semaphore, #tpu.memory_space<semaphore_mem>>
      %134 = tpu.memref_squeeze %133 : memref<1x!tpu.dma_semaphore, #tpu.memory_space<semaphore_mem>> -> memref<!tpu.dma_semaphore, #tpu.memory_space<semaphore_mem>>
      tpu.enqueue_dma source(%131 : memref<1x128xf32, #tpu.memory_space<any>>) target(%132 : memref<1x128xf32, #tpu.memory_space<vmem>>) target_semaphore(%134 : memref<!tpu.dma_semaphore, #tpu.memory_space<semaphore_mem>>)
    } else {
    }
    %true_38 = arith.constant true
    %107 = arith.xori %102, %true_38 : i1
    %108 = arith.andi %107, %103 : i1
    %109 = arith.extui %108 : i1 to i32
    %c0_i32_39 = arith.constant 0 : i32
    %110 = arith.cmpi ne, %109, %c0_i32_39 : i32
    scf.if %110 {
      %cst = arith.constant 0.000000e+00 : f32
      %131 = vector.broadcast %cst : f32 to vector<1x128xf32>
      %132 = arith.index_cast %c6_i32 : i32 to index
      %c0 = arith.constant 0 : index
      %133 = vector.load %arg3[%132, %c0] : memref<8x128xf32, #tpu.memory_space<vmem>>, vector<1x128xf32>
      tpu.vector_store %arg3[%132, %c0], %131 {strides = array<i32>} : memref<8x128xf32, #tpu.memory_space<vmem>>, vector<1x128xf32>,
    } else {
    }
    %111 = arith.extui %104 : i1 to i32
    %112 = arith.addi %96, %111 : i32
    %c7_i32 = arith.constant 7 : i32
    %113 = arith.addi %0, %c7_i32 : i32
    %114 = arith.index_cast %113 : i32 to index
    %115 = memref.load %arg1[%114] : memref<16xi32, #tpu.memory_space<smem>>
    %c0_i32_40 = arith.constant 0 : i32
    %116 = arith.cmpi sge, %115, %c0_i32_40 : i32
    %c256_i32_41 = arith.constant 256 : i32
    %117 = arith.cmpi slt, %115, %c256_i32_41 : i32
    %118 = arith.andi %116, %117 : i1
    %c16_i32_42 = arith.constant 16 : i32
    %119 = arith.cmpi slt, %113, %c16_i32_42 : i32
    %120 = arith.andi %118, %119 : i1
    %121 = arith.extui %120 : i1 to i32
    %c0_i32_43 = arith.constant 0 : i32
    %122 = arith.cmpi ne, %121, %c0_i32_43 : i32
    scf.if %122 {
      %c0_i32_50 = arith.constant 0 : i32
      %c0_i32_51 = arith.constant 0 : i32
      %131 = tpu.memref_slice %arg2[%115, %c0_i32_51] : memref<256x128xf32, #tpu.memory_space<any>> -> memref<1x128xf32, #tpu.memory_space<any>>
      %c0_i32_52 = arith.constant 0 : i32
      %132 = tpu.memref_slice %arg3[%c7_i32, %c0_i32_52] : memref<8x128xf32, #tpu.memory_space<vmem>> -> memref<1x128xf32, #tpu.memory_space<vmem>>
      %133 = tpu.memref_slice %arg4[%c0_i32_50] : memref<1x!tpu.dma_semaphore, #tpu.memory_space<semaphore_mem>> -> memref<1x!tpu.dma_semaphore, #tpu.memory_space<semaphore_mem>>
      %134 = tpu.memref_squeeze %133 : memref<1x!tpu.dma_semaphore, #tpu.memory_space<semaphore_mem>> -> memref<!tpu.dma_semaphore, #tpu.memory_space<semaphore_mem>>
      tpu.enqueue_dma source(%131 : memref<1x128xf32, #tpu.memory_space<any>>) target(%132 : memref<1x128xf32, #tpu.memory_space<vmem>>) target_semaphore(%134 : memref<!tpu.dma_semaphore, #tpu.memory_space<semaphore_mem>>)
    } else {
    }
    %true_44 = arith.constant true
    %123 = arith.xori %118, %true_44 : i1
    %124 = arith.andi %123, %119 : i1
    %125 = arith.extui %124 : i1 to i32
    %c0_i32_45 = arith.constant 0 : i32
    %126 = arith.cmpi ne, %125, %c0_i32_45 : i32
    scf.if %126 {
      %cst = arith.constant 0.000000e+00 : f32
      %131 = vector.broadcast %cst : f32 to vector<1x128xf32>
      %132 = arith.index_cast %c7_i32 : i32 to index
      %c0 = arith.constant 0 : index
      %133 = vector.load %arg3[%132, %c0] : memref<8x128xf32, #tpu.memory_space<vmem>>, vector<1x128xf32>
      tpu.vector_store %arg3[%132, %c0], %131 {strides = array<i32>} : memref<8x128xf32, #tpu.memory_space<vmem>>, vector<1x128xf32>,
    } else {
    }
    %127 = arith.extui %120 : i1 to i32
    %128 = arith.addi %112, %127 : i32
    %c8_i32_46 = arith.constant 8 : i32
    %c0_i32_47 = arith.constant 0 : i32
    %c0_i32_48 = arith.constant 0 : i32
    %129 = arith.subi %128, %c0_i32_48 : i32
    %130 = arith.addi %c0_i32_48, %129 : i32
    %c1_i32_49 = arith.constant 1 : i32
    scf.for %arg5 = %c0_i32_48 to %130 step %c1_i32_49  : i32 {
      %c0_i32_50 = arith.constant 0 : i32
      %c0_i32_51 = arith.constant 0 : i32
      %c0_i32_52 = arith.constant 0 : i32
      %131 = tpu.memref_slice %arg2[%c0_i32_51, %c0_i32_52] : memref<256x128xf32, #tpu.memory_space<any>> -> memref<1x128xf32, #tpu.memory_space<any>>
      %c0_i32_53 = arith.constant 0 : i32
      %c0_i32_54 = arith.constant 0 : i32
      %132 = tpu.memref_slice %arg3[%c0_i32_53, %c0_i32_54] : memref<8x128xf32, #tpu.memory_space<vmem>> -> memref<1x128xf32, #tpu.memory_space<vmem>>
      %133 = tpu.memref_slice %arg4[%c0_i32_50] : memref<1x!tpu.dma_semaphore, #tpu.memory_space<semaphore_mem>> -> memref<1x!tpu.dma_semaphore, #tpu.memory_space<semaphore_mem>>
      %134 = tpu.memref_squeeze %133 : memref<1x!tpu.dma_semaphore, #tpu.memory_space<semaphore_mem>> -> memref<!tpu.dma_semaphore, #tpu.memory_space<semaphore_mem>>
      tpu.wait_dma2 semaphore(%134 : memref<!tpu.dma_semaphore, #tpu.memory_space<semaphore_mem>>) src(%131 : memref<1x128xf32, #tpu.memory_space<any>>) dst(%132 : memref<1x128xf32, #tpu.memory_space<vmem>>)
    }
    return
  }
  func.func @transform_1(%arg0: i32, %arg1: memref<16xi32, #tpu.memory_space<smem>>) -> (i32, i32) {
    %c0_i32 = arith.constant 0 : i32
    %c0_i32_0 = arith.constant 0 : i32
    return %arg0, %c0_i32 : i32, i32
  }
}

</mosaic_0001>

<bundles_post_ra>
// kernel: _embedding_gather.1
= control target key start
LH: loop header
LB: loop body
LE: loop exit
PB: predicated region body
PF: predicated region fallthrough
CT: control target
= control target key end

     0   :  { %s816_s12 = smov [#allocation4]   ;;  %s1262_s0 = inlined_call_operand.hbm [shape: s32[16], index: 0, kind: input, shape index: {}]   ;;  %s1263_s1 = inlined_call_operand.hbm [shape: f32[256,128], index: 1, kind: input, shape index: {}]   ;;  %s1264_s2 = inlined_call_operand.hbm [shape: f32[16,128], index: 2, kind: output, shape index: {}]  }
   0x1   :  { %s8_s11 = sshll.u32 %s1262_s0, 4  ;;  %s9_s11 = int_to_ptr.hbm [resolvable:$true] %s8_s11 }
   0x2   :  { %11 = dma.hbm_to_smem %s9_s11, 16, %s816_s12, [#allocation3] }
   0x3   :  { %792 = dma.done.wait [#allocation3], 16 }
   0x4   :  { %793 = vsyncadd [#allocation3], 4294967280 }
   0x5   :  { %14 = sfence }
   0x6   :  { %15 = vsyncpa [#allocation6], 0 }
   0x7   :  { %17 = vsyncpa [#allocation6 + $0x1], 0  ;;  %s843_s13 = smov 0   ;;  %s845_s14 = smov 0  }
   0x8   :  { %s847_s15 = smov 0  }
   0x9 LB: > { %s413_s0 = sadd.s32 4294967295, %s810_s15   ;;  %s860_s16 = sadd.s32 1, %s810_s15   ;;  %s810_s15 = sphi %s847_s15, %s1294_s15   ;;  %s806_s14 = sphi %s845_s14, %s1293_s14   ;;  %s802_s13 = sphi %s843_s13, %s1292_s13  }
   0xa   : > { %s26_s17 = ssub.s32 %s810_s15, %s860_s16  ;;  %s29_s18 = sadd.s32 1, %s806_s14 }
   0xb   : > { %p27_p0 = scmp.eq.s32.totalorder %s26_s17, 0  ;;  %p414_p1 = scmp.ne.s32.totalorder %s26_s17, 0 }
   0xc   : > { %p33_p2 = scmp.eq.s32.totalorder %s810_s15, 1  ;;  %p38_p3 = scmp.ne.s32.totalorder %s806_s14, %s802_s13 }
   0xd   : > { %s869_s19 = scalar_select %p27_p0, %s806_s14, %s29_s18  }
   0xe   : > { %p871_p4 = por %p414_p1, %p33_p2  ;;  %p39_p5 = scmp.eq.s32.totalorder %s413_s0, 1 }
   0xf   : > { %p415_p7 = scmp.ge.s32.totalorder %s810_s15, 2 }
  0x10   : > { %p875_p6 = por %p39_p5, %p38_p3  ;;  %s53_s22 = sand.u32 (!%p415_p7), 1, %s806_s14  }
  0x11   : > { %48 = sbr.rel (%p415_p7) target bundleno = 316 (0x13c), region = 12  ;;  %s882_s23 = sshll.u32 (!%p415_p7), %s810_s15, 3 }
  0x12   : > { %s1266_s21 = scalar_select %p875_p6, 1, 0 }
  0x13   : > { %s57_s24 = sld [smem:[#allocation4 + %s882_s23]] (!%p415_p7)  ;;  %s416_s25 = sshll.u32 (!%p415_p7), %s53_s22, 3 }
  0x14   : > { %p62_p10 = scmp.lt.s32.totalorder (!%p415_p7), %s882_s23, 16  ;;  %s891_s29 = scalar_lea.vmem (!%p415_p7), [#allocation5], %s416_s25 }
  0x15   : > { %s77_s30 = sshll.u32 (!%p415_p7), %s891_s29, 4  ;;  %s909_s10 = scalar_lea.hbm (!%p415_p7), %s1263_s1, 256  ;;  %s898_s30 = int_to_ptr.vmem [resolvable:$true] %s77_s30 }
  0x19   : > { %p58_p8 = scmp.ge.s32.totalorder %s57_s24, 0  ;;  %p59_p9 = scmp.lt.s32.totalorder %s57_s24, 256 }
  0x1a   : > { %s67_s28 = scalar_lea.hbm %s1263_s1, %s57_s24 }
  0x1b   : > { %p60_p11 = pnand %p59_p9, %p58_p8  ;;  %s75_s3 = sshll.u32 %s67_s28, 4  ;;  %s76_s3 = int_to_ptr.hbm [resolvable:$true] %s75_s3 }
  0x1c   : > { %s508_s6 = sshra.s32 %s76_s3, 4  ;;  %s509_s6 = int_to_ptr.hbm [resolvable:$true] %s508_s6 }
  0x1d   : > { %p61_p12 = pneg %p60_p11  ;;  %p894_p13 = pnand %p62_p10, %p60_p11 }
  0x1e   : > { %s510_s7 = scalar_lea.hbm %s509_s6, 1  ;;  %p516_p7 = scmp.lt.s32.totalorder %s509_s6, %s1263_s1 }
  0x1f   : > { %p900_p0 = pnand %p62_p10, %p61_p12  ;;  %p511_p1 = scmp.ne.s32.totalorder %s509_s6, %s510_s7 }
  0x20   : > { %p517_p8 = scmp.lt.s32.totalorder %s909_s10, %s510_s7 }
  0x21   : > { %p512_p2 = pneg %p900_p0 }
  0x22   : > { %p518_p9 = por %p517_p8, %p516_p7 }
  0x23   : > { %p513_p3 = pnand %p512_p2, %p511_p1 }
  0x25   : > { %p514_p5 = pneg %p513_p3 }
  0x27   : > { %p519_p10 = pnand %p518_p9, %p514_p5 }
  0x29   : > { %522 = shalt.err (!%p519_p10)  }
  0x2a   : > { %433 = dma.hbm_to_vmem [thread:$0]  (!%p900_p0), %s76_s3, 16, %s898_s30, [#allocation2] }
  0x2b   : > { %85 = sbr.rel (%p894_p13) target bundleno = 50 (0x32), region = 24 }
  0x30   : > { %v817_v0 = vmov 0.0  }
  0x31   : > { %86 = vst [vmem:[%s891_s29] sm:$0x1] %v817_v0 }
  0x32 PF: > { %s418_s0 = scalar_select %p900_p0, 0, 1 }
  0x33   : > { %s88_s17 = sadd.s32 1, %s882_s23  ;;  %s100_s24 = scalar_lea.vmem %s891_s29, 1 [#allocation5] }
  0x34   : > { %s89_s18 = sld [smem:[#allocation4 + %s88_s17]]  ;;  %p925_p1 = scmp.lt.s32.totalorder %s88_s17, 16 }
  0x35   : > { %s110_s4 = sshll.u32 %s100_s24, 4  ;;  %s111_s4 = int_to_ptr.vmem [resolvable:$true] %s110_s4 }
  0x3a   : > { %p90_p11 = scmp.ge.s32.totalorder %s89_s18, 0  ;;  %p91_p12 = scmp.lt.s32.totalorder %s89_s18, 256 }
  0x3b   : > { %s99_s28 = scalar_lea.hbm %s1263_s1, %s89_s18 }
  0x3c   : > { %p932_p13 = pnand %p91_p12, %p90_p11  ;;  %s108_s6 = sshll.u32 %s99_s28, 4  ;;  %s109_s6 = int_to_ptr.hbm [resolvable:$true] %s108_s6 }
  0x3d   : > { %s538_s8 = sshra.s32 %s109_s6, 4  ;;  %s539_s8 = int_to_ptr.hbm [resolvable:$true] %s538_s8 }
  0x3e   : > { %p93_p2 = pneg %p932_p13  ;;  %s540_s9 = scalar_lea.hbm %s539_s8, 1 }
  0x3f   : > { %p541_p7 = scmp.ne.s32.totalorder %s539_s8, %s540_s9  ;;  %p546_p11 = scmp.lt.s32.totalorder %s539_s8, %s1263_s1 }
  0x40   : > { %p944_p5 = pnand %p925_p1, %p93_p2  ;;  %p547_p12 = scmp.lt.s32.totalorder %s909_s10, %s540_s9 }
  0x42   : > { %p542_p8 = pneg %p944_p5  ;;  %p548_p3 = por %p547_p12, %p546_p11 }
  0x44   : > { %p543_p9 = pnand %p542_p8, %p541_p7 }
  0x46   : > { %p544_p10 = pneg %p543_p9 }
  0x48   : > { %p549_p2 = pnand %p548_p3, %p544_p10 }
  0x4a   : > { %552 = shalt.err (!%p549_p2)  }
  0x4b   : > { %435 = dma.hbm_to_vmem [thread:$0]  (!%p944_p5), %s109_s6, 16, %s111_s4, [#allocation2] }
  0x4c   : > { %p1272_p6 = pnand %p925_p1, %p932_p13 }
  0x4e   : > { %118 = sbr.rel (%p1272_p6) target bundleno = 85 (0x55), region = 36 }
  0x53   : > { %v818_v1 = vmov 0.0  }
  0x54   : > { %119 = vst [vmem:[%s891_s29 + $0x1] sm:$0x1] %v818_v1 }
  0x55 PF: > { %s419_s17 = scalar_select %p944_p5, 0, 1 }
  0x56   : > { %s122_s18 = sadd.s32 2, %s882_s23  ;;  %s134_s26 = scalar_lea.vmem %s891_s29, 2 [#allocation5] }
  0x57   : > { %s968_s24 = sadd.s32 %s419_s17, %s418_s0  ;;  %s123_s25 = sld [smem:[#allocation4 + %s122_s18]] }
  0x58   : > { %p971_p6 = scmp.lt.s32.totalorder %s122_s18, 16  ;;  %s144_s5 = sshll.u32 %s134_s26, 4  ;;  %s145_s5 = int_to_ptr.vmem [resolvable:$true] %s144_s5 }
  0x5d   : > { %p124_p3 = scmp.ge.s32.totalorder %s123_s25, 0  ;;  %p125_p1 = scmp.lt.s32.totalorder %s123_s25, 256 }
  0x5e   : > { %s133_s4 = scalar_lea.hbm %s1263_s1, %s123_s25 }
  0x5f   : > { %p978_p13 = pnand %p125_p1, %p124_p3  ;;  %s142_s0 = sshll.u32 %s133_s4, 4  ;;  %s143_s0 = int_to_ptr.hbm [resolvable:$true] %s142_s0 }
  0x60   : > { %s568_s8 = sshra.s32 %s143_s0, 4  ;;  %s569_s8 = int_to_ptr.hbm [resolvable:$true] %s568_s8 }
  0x61   : > { %p127_p0 = pneg %p978_p13  ;;  %p149_p5 = pnand %p971_p6, %p978_p13 }
  0x62   : > { %s570_s9 = scalar_lea.hbm %s569_s8, 1  ;;  %p576_p12 = scmp.lt.s32.totalorder %s569_s8, %s1263_s1 }
  0x63   : > { %p990_p7 = pnand %p971_p6, %p127_p0  ;;  %p571_p8 = scmp.ne.s32.totalorder %s569_s8, %s570_s9 }
  0x64   : > { %p577_p2 = scmp.lt.s32.totalorder %s909_s10, %s570_s9 }
  0x65   : > { %p572_p9 = pneg %p990_p7 }
  0x66   : > { %p578_p3 = por %p577_p2, %p576_p12 }
  0x67   : > { %p573_p10 = pnand %p572_p9, %p571_p8 }
  0x69   : > { %p574_p11 = pneg %p573_p10 }
  0x6b   : > { %p579_p1 = pnand %p578_p3, %p574_p11 }
  0x6d   : > { %582 = shalt.err (!%p579_p1)  }
  0x6e   : > { %437 = dma.hbm_to_vmem [thread:$0]  (!%p990_p7), %s143_s0, 16, %s145_s5, [#allocation2] }
  0x6f   : > { %152 = sbr.rel (%p149_p5) target bundleno = 118 (0x76), region = 48 }
  0x74   : > { %v819_v2 = vmov 0.0  }
  0x75   : > { %153 = vst [vmem:[%s891_s29 + $0x2] sm:$0x1] %v819_v2 }
  0x76 PF: > { %s420_s17 = scalar_select %p990_p7, 0, 1 }
  0x77   : > { %s156_s18 = sadd.s32 3, %s882_s23  ;;  %s168_s28 = scalar_lea.vmem %s891_s29, 3 [#allocation5] }
  0x78   : > { %s1012_s25 = sadd.s32 %s420_s17, %s968_s24  ;;  %s157_s26 = sld [smem:[#allocation4 + %s156_s18]] }
  0x79   : > { %p1015_p9 = scmp.lt.s32.totalorder %s156_s18, 16  ;;  %s178_s24 = sshll.u32 %s168_s28, 4  ;;  %s179_s24 = int_to_ptr.vmem [resolvable:$true] %s178_s24 }
  0x7e   : > { %p158_p0 = scmp.ge.s32.totalorder %s157_s26, 0  ;;  %p159_p8 = scmp.lt.s32.totalorder %s157_s26, 256 }
  0x7f   : > { %s167_s6 = scalar_lea.hbm %s1263_s1, %s157_s26 }
  0x80   : > { %p1022_p6 = pnand %p159_p8, %p158_p0  ;;  %s176_s0 = sshll.u32 %s167_s6, 4  ;;  %s177_s0 = int_to_ptr.hbm [resolvable:$true] %s176_s0 }
  0x81   : > { %s598_s8 = sshra.s32 %s177_s0, 4  ;;  %s599_s8 = int_to_ptr.hbm [resolvable:$true] %s598_s8 }
  0x82   : > { %p161_p13 = pneg %p1022_p6  ;;  %p183_p5 = pnand %p1015_p9, %p1022_p6 }
  0x83   : > { %s600_s9 = scalar_lea.hbm %s599_s8, 1  ;;  %p606_p3 = scmp.lt.s32.totalorder %s599_s8, %s1263_s1 }
  0x84   : > { %p1034_p7 = pnand %p1015_p9, %p161_p13  ;;  %p601_p10 = scmp.ne.s32.totalorder %s599_s8, %s600_s9 }
  0x85   : > { %p607_p1 = scmp.lt.s32.totalorder %s909_s10, %s600_s9 }
  0x86   : > { %p602_p11 = pneg %p1034_p7 }
  0x87   : > { %p608_p0 = por %p607_p1, %p606_p3 }
  0x88   : > { %p603_p12 = pnand %p602_p11, %p601_p10 }
  0x8a   : > { %p604_p2 = pneg %p603_p12 }
  0x8c   : > { %p609_p8 = pnand %p608_p0, %p604_p2 }
  0x8e   : > { %612 = shalt.err (!%p609_p8)  }
  0x8f   : > { %439 = dma.hbm_to_vmem [thread:$0]  (!%p1034_p7), %s177_s0, 16, %s179_s24, [#allocation2] }
  0x90   : > { %186 = sbr.rel (%p183_p5) target bundleno = 151 (0x97), region = 60 }
  0x95   : > { %v820_v3 = vmov 0.0  }
  0x96   : > { %187 = vst [vmem:[%s891_s29 + $0x3] sm:$0x1] %v820_v3 }
  0x97 PF: > { %s421_s17 = scalar_select %p1034_p7, 0, 1 }
  0x98   : > { %s190_s18 = sadd.s32 4, %s882_s23  ;;  %s202_s3 = scalar_lea.vmem %s891_s29, 4 [#allocation5] }
  0x99   : > { %s1056_s26 = sadd.s32 %s421_s17, %s1012_s25  ;;  %s191_s28 = sld [smem:[#allocation4 + %s190_s18]] }
  0x9a   : > { %p1059_p11 = scmp.lt.s32.totalorder %s190_s18, 16  ;;  %s212_s25 = sshll.u32 %s202_s3, 4  ;;  %s213_s25 = int_to_ptr.vmem [resolvable:$true] %s212_s25 }
  0x9f   : > { %p192_p13 = scmp.ge.s32.totalorder %s191_s28, 0  ;;  %p193_p10 = scmp.lt.s32.totalorder %s191_s28, 256 }
  0xa0   : > { %s201_s5 = scalar_lea.hbm %s1263_s1, %s191_s28 }
  0xa1   : > { %p1066_p9 = pnand %p193_p10, %p192_p13  ;;  %s210_s0 = sshll.u32 %s201_s5, 4  ;;  %s211_s0 = int_to_ptr.hbm [resolvable:$true] %s210_s0 }
  0xa2   : > { %s628_s8 = sshra.s32 %s211_s0, 4  ;;  %s629_s8 = int_to_ptr.hbm [resolvable:$true] %s628_s8 }
  0xa3   : > { %p195_p6 = pneg %p1066_p9  ;;  %p217_p5 = pnand %p1059_p11, %p1066_p9 }
  0xa4   : > { %s630_s9 = scalar_lea.hbm %s629_s8, 1  ;;  %p636_p0 = scmp.lt.s32.totalorder %s629_s8, %s1263_s1 }
  0xa5   : > { %p1078_p7 = pnand %p1059_p11, %p195_p6  ;;  %p631_p12 = scmp.ne.s32.totalorder %s629_s8, %s630_s9 }
  0xa6   : > { %p637_p8 = scmp.lt.s32.totalorder %s909_s10, %s630_s9 }
  0xa7   : > { %p632_p2 = pneg %p1078_p7 }
  0xa8   : > { %p638_p13 = por %p637_p8, %p636_p0 }
  0xa9   : > { %p633_p3 = pnand %p632_p2, %p631_p12 }
  0xab   : > { %p634_p1 = pneg %p633_p3 }
  0xad   : > { %p639_p10 = pnand %p638_p13, %p634_p1 }
  0xaf   : > { %642 = shalt.err (!%p639_p10)  }
  0xb0   : > { %441 = dma.hbm_to_vmem [thread:$0]  (!%p1078_p7), %s211_s0, 16, %s213_s25, [#allocation2] }
  0xb1   : > { %220 = sbr.rel (%p217_p5) target bundleno = 184 (0xb8), region = 72 }
  0xb6   : > { %v821_v4 = vmov 0.0  }
  0xb7   : > { %221 = vst [vmem:[%s891_s29 + $0x4] sm:$0x1] %v821_v4 }
  0xb8 PF: > { %s422_s17 = scalar_select %p1078_p7, 0, 1 }
  0xb9   : > { %s224_s18 = sadd.s32 5, %s882_s23  ;;  %s236_s4 = scalar_lea.vmem %s891_s29, 5 [#allocation5] }
  0xba   : > { %s1100_s28 = sadd.s32 %s422_s17, %s1056_s26  ;;  %s225_s3 = sld [smem:[#allocation4 + %s224_s18]] }
  0xbb   : > { %p1103_p2 = scmp.lt.s32.totalorder %s224_s18, 16  ;;  %s246_s26 = sshll.u32 %s236_s4, 4  ;;  %s247_s26 = int_to_ptr.vmem [resolvable:$true] %s246_s26 }
  0xc0   : > { %p226_p6 = scmp.ge.s32.totalorder %s225_s3, 0  ;;  %p227_p12 = scmp.lt.s32.totalorder %s225_s3, 256 }
  0xc1   : > { %s235_s24 = scalar_lea.hbm %s1263_s1, %s225_s3 }
  0xc2   : > { %p1110_p11 = pnand %p227_p12, %p226_p6  ;;  %s244_s0 = sshll.u32 %s235_s24, 4  ;;  %s245_s0 = int_to_ptr.hbm [resolvable:$true] %s244_s0 }
  0xc3   : > { %s658_s8 = sshra.s32 %s245_s0, 4  ;;  %s659_s8 = int_to_ptr.hbm [resolvable:$true] %s658_s8 }
  0xc4   : > { %p229_p9 = pneg %p1110_p11  ;;  %p251_p5 = pnand %p1103_p2, %p1110_p11 }
  0xc5   : > { %s660_s9 = scalar_lea.hbm %s659_s8, 1  ;;  %p666_p13 = scmp.lt.s32.totalorder %s659_s8, %s1263_s1 }
  0xc6   : > { %p1122_p7 = pnand %p1103_p2, %p229_p9  ;;  %p661_p3 = scmp.ne.s32.totalorder %s659_s8, %s660_s9 }
  0xc7   : > { %p667_p10 = scmp.lt.s32.totalorder %s909_s10, %s660_s9 }
  0xc8   : > { %p662_p1 = pneg %p1122_p7 }
  0xc9   : > { %p668_p6 = por %p667_p10, %p666_p13 }
  0xca   : > { %p663_p0 = pnand %p662_p1, %p661_p3 }
  0xcc   : > { %p664_p8 = pneg %p663_p0 }
  0xce   : > { %p669_p12 = pnand %p668_p6, %p664_p8 }
  0xd0   : > { %672 = shalt.err (!%p669_p12)  }
  0xd1   : > { %443 = dma.hbm_to_vmem [thread:$0]  (!%p1122_p7), %s245_s0, 16, %s247_s26, [#allocation2] }
  0xd2   : > { %254 = sbr.rel (%p251_p5) target bundleno = 217 (0xd9), region = 84 }
  0xd7   : > { %v822_v5 = vmov 0.0  }
  0xd8   : > { %255 = vst [vmem:[%s891_s29 + $0x5] sm:$0x1] %v822_v5 }
  0xd9 PF: > { %s423_s17 = scalar_select %p1122_p7, 0, 1 }
  0xda   : > { %s258_s18 = sadd.s32 6, %s882_s23  ;;  %s270_s6 = scalar_lea.vmem %s891_s29, 6 [#allocation5] }
  0xdb   : > { %s1144_s3 = sadd.s32 %s423_s17, %s1100_s28  ;;  %s259_s4 = sld [smem:[#allocation4 + %s258_s18]] }
  0xdc   : > { %p1147_p1 = scmp.lt.s32.totalorder %s258_s18, 16  ;;  %s280_s28 = sshll.u32 %s270_s6, 4  ;;  %s281_s28 = int_to_ptr.vmem [resolvable:$true] %s280_s28 }
  0xe1   : > { %p260_p9 = scmp.ge.s32.totalorder %s259_s4, 0  ;;  %p261_p3 = scmp.lt.s32.totalorder %s259_s4, 256 }
  0xe2   : > { %s269_s25 = scalar_lea.hbm %s1263_s1, %s259_s4 }
  0xe3   : > { %p1154_p2 = pnand %p261_p3, %p260_p9  ;;  %s278_s0 = sshll.u32 %s269_s25, 4  ;;  %s279_s0 = int_to_ptr.hbm [resolvable:$true] %s278_s0 }
  0xe4   : > { %s688_s8 = sshra.s32 %s279_s0, 4  ;;  %s689_s8 = int_to_ptr.hbm [resolvable:$true] %s688_s8 }
  0xe5   : > { %p263_p11 = pneg %p1154_p2  ;;  %p285_p5 = pnand %p1147_p1, %p1154_p2 }
  0xe6   : > { %s690_s9 = scalar_lea.hbm %s689_s8, 1  ;;  %p696_p6 = scmp.lt.s32.totalorder %s689_s8, %s1263_s1 }
  0xe7   : > { %p1166_p7 = pnand %p1147_p1, %p263_p11  ;;  %p691_p0 = scmp.ne.s32.totalorder %s689_s8, %s690_s9 }
  0xe8   : > { %p697_p12 = scmp.lt.s32.totalorder %s909_s10, %s690_s9 }
  0xe9   : > { %p692_p8 = pneg %p1166_p7 }
  0xea   : > { %p698_p9 = por %p697_p12, %p696_p6 }
  0xeb   : > { %p693_p13 = pnand %p692_p8, %p691_p0 }
  0xed   : > { %p694_p10 = pneg %p693_p13 }
  0xef   : > { %p699_p3 = pnand %p698_p9, %p694_p10 }
  0xf1   : > { %702 = shalt.err (!%p699_p3)  }
  0xf2   : > { %445 = dma.hbm_to_vmem [thread:$0]  (!%p1166_p7), %s279_s0, 16, %s281_s28, [#allocation2] }
  0xf3   : > { %288 = sbr.rel (%p285_p5) target bundleno = 250 (0xfa), region = 96 }
  0xf8   : > { %v823_v6 = vmov 0.0  }
  0xf9   : > { %289 = vst [vmem:[%s891_s29 + $0x6] sm:$0x1] %v823_v6 }
  0xfa PF: > { %s424_s17 = scalar_select %p1166_p7, 0, 1 }
  0xfb   : > { %s292_s18 = sadd.s32 7, %s882_s23  ;;  %s304_s5 = scalar_lea.vmem %s891_s29, 7 [#allocation5] }
  0xfc   : > { %s1188_s4 = sadd.s32 %s424_s17, %s1144_s3  ;;  %s293_s6 = sld [smem:[#allocation4 + %s292_s18]] }
  0xfd   : > { %p1191_p8 = scmp.lt.s32.totalorder %s292_s18, 16  ;;  %s314_s3 = sshll.u32 %s304_s5, 4  ;;  %s315_s3 = int_to_ptr.vmem [resolvable:$true] %s314_s3 }
 0x102   : > { %p294_p11 = scmp.ge.s32.totalorder %s293_s6, 0  ;;  %p295_p0 = scmp.lt.s32.totalorder %s293_s6, 256 }
 0x103   : > { %s303_s26 = scalar_lea.hbm %s1263_s1, %s293_s6 }
 0x104   : > { %p1198_p1 = pnand %p295_p0, %p294_p11  ;;  %s312_s0 = sshll.u32 %s303_s26, 4  ;;  %s313_s0 = int_to_ptr.hbm [resolvable:$true] %s312_s0 }
 0x105   : > { %s718_s8 = sshra.s32 %s313_s0, 4  ;;  %s719_s8 = int_to_ptr.hbm [resolvable:$true] %s718_s8 }
 0x106   : > { %p297_p2 = pneg %p1198_p1  ;;  %p319_p5 = pnand %p1191_p8, %p1198_p1 }
 0x107   : > { %s720_s9 = scalar_lea.hbm %s719_s8, 1  ;;  %p726_p9 = scmp.lt.s32.totalorder %s719_s8, %s1263_s1 }
 0x108   : > { %p1210_p7 = pnand %p1191_p8, %p297_p2  ;;  %p721_p13 = scmp.ne.s32.totalorder %s719_s8, %s720_s9 }
 0x109   : > { %p727_p3 = scmp.lt.s32.totalorder %s909_s10, %s720_s9 }
 0x10a   : > { %p722_p10 = pneg %p1210_p7 }
 0x10b   : > { %p728_p11 = por %p727_p3, %p726_p9 }
 0x10c   : > { %p723_p6 = pnand %p722_p10, %p721_p13 }
 0x10e   : > { %p724_p12 = pneg %p723_p6 }
 0x110   : > { %p729_p0 = pnand %p728_p11, %p724_p12 }
 0x112   : > { %732 = shalt.err (!%p729_p0)  }
 0x113   : > { %447 = dma.hbm_to_vmem [thread:$0]  (!%p1210_p7), %s313_s0, 16, %s315_s3, [#allocation2] }
 0x114   : > { %322 = sbr.rel (%p319_p5) target bundleno = 283 (0x11b), region = 108 }
 0x119   : > { %v824_v7 = vmov 0.0  }
 0x11a   : > { %323 = vst [vmem:[%s891_s29 + $0x7] sm:$0x1] %v824_v7 }
 0x11b PF: > { %s425_s10 = scalar_select %p1210_p7, 0, 1 }
 0x11d   : > { %s325_s17 = sadd.s32 %s425_s10, %s1188_s4 }
 0x11e   : > { %p426_p2 = scmp.le.s32.totalorder %s325_s17, 0 }
 0x11f   : > { %s812_s18 = smov (!%p426_p2), 0  }
 0x120   : > { %399 = sbr.rel (%p426_p2) target bundleno = 302 (0x12e), region = 156 }
 0x125 LB: >> { %794 = dma.done.wait [#allocation2], 16  ;;  %s814_s18 = sphi %s812_s18, %s329_s18  }
 0x126   : >> { %795 = vsyncadd [#allocation2], 4294967280  ;;  %s329_s18 = sadd.s32 1, %s814_s18  }
 0x127   : >> { %p328_p8 = scmp.ge.s32.totalorder %s329_s18, %s325_s17 }
 0x129   : > { %331 = sbr.rel (!%p328_p8) target bundleno = 293 (0x125), region = 162 }
 0x12e PF: > { %s346_s4 = scalar_lea.hbm %s1264_s2, %s882_s23  ;;  %s336_s27 = scalar_lea.sflag [#allocation6], %s53_s22 }
 0x12f   : > { %s350_s5 = sshll.u32 %s346_s4, 4  ;;  %s768_s3 = scalar_lea.hbm %s1264_s2, 16  ;;  %s351_s5 = int_to_ptr.hbm [resolvable:$true] %s350_s5 }
 0x130   : > { %s762_s24 = sshra.s32 %s351_s5, 4  ;;  %s763_s24 = int_to_ptr.hbm [resolvable:$true] %s762_s24 }
 0x131   : > { %s764_s25 = scalar_lea.hbm %s763_s24, 8  ;;  %p769_p13 = scmp.lt.s32.totalorder %s763_s24, %s1264_s2 }
 0x132   : > { %p765_p1 = scmp.ne.s32.totalorder %s763_s24, %s764_s25  ;;  %p770_p10 = scmp.lt.s32.totalorder %s768_s3, %s764_s25 }
 0x134   : > { %p766_p5 = pnand %p765_p1, %p871_p4  ;;  %p771_p6 = por %p770_p10, %p769_p13 }
 0x136   : > { %p767_p7 = pneg %p766_p5 }
 0x138   : > { %p772_p12 = pnand %p771_p6, %p767_p7 }
 0x13a   : > { %775 = shalt.err (!%p772_p12)
}
 0x13b   : > { %448 = dma.vmem_to_hbm [thread:$0]  (%p871_p4), %s898_s30, 128, %s351_s5, %s336_s27  }
 0x13c PF: > { %p454_p9 = scmp.ge.s32.totalorder %s810_s15, 1  ;;  %s362_s22 = sand.u32 1, %s802_s13  }
 0x13d   : > { %p1291_p3 = scmp.ne.s32.totalorder %s1266_s21, 0  ;;  %s363_s23 = scalar_lea.sflag [#allocation6], %s362_s22 }
 0x13f   : > { %p451_p11 = pnand %p454_p9, %p1291_p3 }
 0x141   : > { %p452_p0 = pneg %p451_p11 }
 0x143   : > { %797 = dma.done.wait (%p452_p0), %s363_s23, 128  }
 0x144   : > { %799 = vsyncadd (%p452_p0), %s363_s23, 4294967168  ;;  %p20_p2 = scmp.ge.s32.totalorder %s860_s16, 3   ;;  %s1292_s13 = smov %s806_s14 }
 0x145   : > { %s1293_s14 = smov %s869_s19  ;;  %s1294_s15 = smov %s860_s16 }
 0x146   :  { %22 = sbr.rel (!%p20_p2) target bundleno = 9 (0x9), region = 173 }
 0x14b   :  { %369 = vsyncpa [#allocation6], 1 }
 0x14c   :  { %371 = vsyncpa [#allocation6 + $0x1], 1 }
 0x14d   :  { %372 = vsyncmov [#allocation2] }
 0x150   :  { %s373_s15 = vpop.sfrf %372 }
 0x151   :  { %p431_p4 = scmp.ne.s32.totalorder %s373_s15, 0 }
 0x153   :  { %377 = shalt.err (%p431_p4)  }

</bundles_post_ra>
